<compile_context>
chip_gen: v7x
topology: tpu7x:2x2x1
jax: 0.10.0
libtpu: 0.0.40
codegen_flags: <defaults>
</compile_context>

<pallas_src>
import jax
import jax.numpy as jnp
from jax import lax
from jax.experimental import pallas as pl
from jax.experimental.pallas import tpu as pltpu


_TILE_TARGET_BYTES = 4 * 1024 * 1024     # f32-equivalent VMEM footprint per input tile
_VMEM_LIMIT_BYTES = 48 * 1024 * 1024     # < 64 MiB physical per-TC on v7x, fine on v5e/v6e

_NCORES_CACHE = None


def _detect_ncores():
    """2 TensorCores (megacore-style) chips get a size-2 'parallel' axis; else 1."""
    global _NCORES_CACHE
    if _NCORES_CACHE is not None:
        return _NCORES_CACHE
    ncores = 1
    try:
        kind = jax.devices()[0].device_kind.lower()
        if ("v7" in kind) or ("7x" in kind) or ("v4" in kind) or ("v5p" in kind) or ("v5 p" in kind):
            ncores = 2
    except Exception:
        ncores = 1
    _NCORES_CACHE = ncores
    return ncores


def _row_block(n, d):
    """Row-tile size: ~4 MiB f32-equivalent VMEM footprint, rows a multiple of 8.

    Sizing uses the lane-padded width (VMEM lays the last dim out in 128-lane tiles),
    so small-D inputs don't silently blow the VMEM budget.
    """
    lane_d = ((d + 127) // 128) * 128
    rows = _TILE_TARGET_BYTES // (lane_d * 4)
    rows = max(8, (rows // 8) * 8)
    n8 = ((n + 7) // 8) * 8
    return max(8, min(rows, n8))


def _make_kernel(n_valid, bn, needs_row_mask):
    """Kernel factory: n_valid/bn/needs_row_mask are static (closed over)."""

    def kernel(pred_ref, lab_ref, mask_ref, tot_ref, prot_ref):
        i = pl.program_id(1)

        @pl.when(i == 0)
        def _init():
            tot_ref[...] = jnp.zeros_like(tot_ref)
            prot_ref[...] = jnp.zeros_like(prot_ref)

        # Stream native dtype, upcast in VMEM (halves HBM traffic for bf16 inputs).
        diff = pred_ref[...].astype(jnp.float32) - lab_ref[...].astype(jnp.float32)
        sq = diff * diff

        if needs_row_mask:
            # Ragged tail / clamped out-of-range blocks: zero out rows >= n_valid.
            # Row base uses the UNclamped grid position, so clamped blocks (whose
            # data belongs to another block) contribute exactly 0.
            base = (pl.program_id(0) * pl.num_programs(1) + i) * bn
            row_ids = base + lax.broadcasted_iota(jnp.int32, (bn, 1), 0)
            sq = jnp.where(row_ids < n_valid, sq, jnp.float32(0.0))

        # Protected contribution via select (not multiply): OOB mask rows may be
        # garbage, but sq there is already 0 and select never produces NaN.
        prot_sq = jnp.where(mask_ref[...] > jnp.float32(0.5), sq, jnp.float32(0.0))

        # Per-block tree reduction, then accumulate the scalar partial sum into the
        # resident lane-dense output tile (pure VPU/XLU work, no big scratch).
        tot_ref[...] += jnp.sum(sq)
        prot_ref[...] += jnp.sum(prot_sq)

    return kernel


def _fair_mse_sums(outputs, labels, mask_col, n, d, bn, ncores, bpc, nblocks):
    """Returns per-core partial (sum(sq), sum(sq*protected)) as (ncores, 8, 128) f32."""
    needs_row_mask = (ncores * bpc * bn != n)
    kernel = _make_kernel(n, bn, needs_row_mask)
    last_block = nblocks - 1

    def row_map(c, i):
        idx = c * bpc + i
        if needs_row_mask:
            # Keep every DMA fully in-bounds; the kernel masks the rows instead.
            idx = jnp.minimum(idx, last_block)
        return (idx, 0)

    def out_map(c, i):
        return (c, 0, 0)

    bytes_accessed = int(
        n * d * (outputs.dtype.itemsize + labels.dtype.itemsize)  # two input streams
        + n * 4                                                   # protected mask column
        + 2 * ncores * 8 * 128 * 4                                # tiny outputs
    )

    return pl.pallas_call(
        kernel,
        out_shape=(
            jax.ShapeDtypeStruct((ncores, 8, 128), jnp.float32),
            jax.ShapeDtypeStruct((ncores, 8, 128), jnp.float32),
        ),
        grid_spec=pltpu.PrefetchScalarGridSpec(
            num_scalar_prefetch=0,
            grid=(ncores, bpc),
            in_specs=[
                pl.BlockSpec((bn, d), row_map),   # outputs (native dtype)
                pl.BlockSpec((bn, d), row_map),   # labels  (native dtype)
                pl.BlockSpec((bn, 1), row_map),   # per-row protected indicator (f32)
            ],
            out_specs=(
                pl.BlockSpec((1, 8, 128), out_map),
                pl.BlockSpec((1, 8, 128), out_map),
            ),
        ),
        compiler_params=pltpu.CompilerParams(
            dimension_semantics=("parallel", "arbitrary"),
            vmem_limit_bytes=_VMEM_LIMIT_BYTES,
        ),
        cost_estimate=pl.CostEstimate(
            flops=3 * n * d,
            transcendentals=0,
            bytes_accessed=bytes_accessed,
        ),
    )(outputs, labels, mask_col)


def fair_mse_forward(outputs, labels, classes, alpha_fairness,
                     params=None, use_l1=False):
    """FairMSE.forward equivalent (jittable, branchless, no host sync).

    outputs, labels : (N, D) float (any float dtype; math done in f32)
    classes         : (N,)   int/bool mask of protected samples
    Returns (loss, total_mse, protected_mse). protected_mse is NaN when there are
    no protected samples (PyTorch returns None there).
    """
    n, d = outputs.shape
    mask_col = classes.astype(jnp.float32).reshape(n, 1)

    bn = _row_block(n, d)
    nblocks = -(-n // bn)                              # cdiv
    ncores = max(1, min(_detect_ncores(), nblocks))
    bpc = -(-nblocks // ncores)                        # blocks per core

    tot_part, prot_part = _fair_mse_sums(outputs, labels, mask_col,
                                         n, d, bn, ncores, bpc, nblocks)
    tot_sum = jnp.sum(tot_part[:, 0, 0])
    prot_sum = jnp.sum(prot_part[:, 0, 0])

    total_mse = tot_sum / jnp.float32(n * d)

    regularizer = jnp.float32(0.0)
    if use_l1 and params is not None:
        # compute_L1: sum of |param| over non-bias params (plain JAX glue).
        for name, p in params:
            if "bias" not in name:
                regularizer = regularizer + jnp.sum(jnp.abs(p))

    # Protected-element count is a cheap O(N) reduce outside the kernel.
    prot_cnt = jnp.sum(classes.astype(jnp.float32)) * jnp.float32(d)
    has_protected = prot_cnt > 0.0
    protected_mse = prot_sum / jnp.maximum(prot_cnt, jnp.float32(1.0))

    fair_loss = (total_mse
                 + alpha_fairness * (protected_mse - total_mse) ** 2
                 + regularizer)
    plain_loss = total_mse + regularizer
    loss = jnp.where(has_protected, fair_loss, plain_loss)
    # TODO(synk): PyTorch returns None for protected_mse when no protected rows;
    # we return NaN branchlessly to keep a static (jit-friendly) output structure.
    protected_mse = jnp.where(has_protected, protected_mse, jnp.float32(jnp.nan))
    return loss, total_mse, protected_mse


if __name__ == "__main__":
    key = jax.random.PRNGKey(0)
    k_out, k_lab, k_cls = jax.random.split(key, 3)

    # Small shapes consistent with the module: batch=8 samples, 32 regression targets.
    N, D = 8, 32
    outputs = jax.random.normal(k_out, (N, D), dtype=jnp.float32)
    labels = jax.random.normal(k_lab, (N, D), dtype=jnp.float32)
    classes = (jax.random.uniform(k_cls, (N,)) > 0.5).astype(jnp.int32)
    classes = classes.at[0].set(1)     # guarantee at least one protected row
    alpha_fairness = 0.5

    fair_fn = jax.jit(fair_mse_forward)
    loss, total_mse, protected_mse = fair_fn(outputs, labels, classes, alpha_fairness)
    jax.block_until_ready((loss, total_mse, protected_mse))

    # Reference check in plain JAX (same math as the PyTorch module).
    ref_total = jnp.mean((outputs - labels) ** 2)
    sel = classes.astype(bool)
    ref_prot = jnp.mean((outputs[sel] - labels[sel]) ** 2)
    ref_loss = ref_total + alpha_fairness * (ref_prot - ref_total) ** 2
    assert jnp.allclose(total_mse, ref_total, rtol=1e-5, atol=1e-6)
    assert jnp.allclose(protected_mse, ref_prot, rtol=1e-5, atol=1e-6)
    assert jnp.allclose(loss, ref_loss, rtol=1e-5, atol=1e-6)

    # Second case: ragged N (not a multiple of 8) + bf16 inputs, exercising the
    # in-kernel tail masking and native-dtype streaming paths.
    N2, D2 = 19, 32
    k2o, k2l, k2c = jax.random.split(jax.random.PRNGKey(1), 3)
    outputs2 = jax.random.normal(k2o, (N2, D2), dtype=jnp.float32).astype(jnp.bfloat16)
    labels2 = jax.random.normal(k2l, (N2, D2), dtype=jnp.float32).astype(jnp.bfloat16)
    classes2 = (jax.random.uniform(k2c, (N2,)) > 0.5).astype(jnp.int32)
    classes2 = classes2.at[0].set(1)

    loss2, total2, prot2 = fair_fn(outputs2, labels2, classes2, alpha_fairness)
    jax.block_until_ready((loss2, total2, prot2))

    o2f = outputs2.astype(jnp.float32)
    l2f = labels2.astype(jnp.float32)
    ref_total2 = jnp.mean((o2f - l2f) ** 2)
    sel2 = classes2.astype(bool)
    ref_prot2 = jnp.mean((o2f[sel2] - l2f[sel2]) ** 2)
    ref_loss2 = ref_total2 + alpha_fairness * (ref_prot2 - ref_total2) ** 2
    assert jnp.allclose(total2, ref_total2, rtol=1e-5, atol=1e-6)
    assert jnp.allclose(prot2, ref_prot2, rtol=1e-5, atol=1e-6)
    assert jnp.allclose(loss2, ref_loss2, rtol=1e-5, atol=1e-6)

    print("KERNEL_OK")
</pallas_src>

<mosaic_0001>
module attributes {stable_mosaic.version = 11 : i64} {
  func.func @kernel(%arg0: i32, %arg1: i32, %arg2: memref<8x32xf32, #tpu.memory_space<vmem>>, %arg3: memref<8x32xf32, #tpu.memory_space<vmem>>, %arg4: memref<8x1xf32, #tpu.memory_space<vmem>>, %arg5: memref<1x8x128xf32, #tpu.memory_space<vmem>>, %arg6: memref<1x8x128xf32, #tpu.memory_space<vmem>>) attributes {dimension_semantics = [#tpu.dimension_semantics<parallel>, #tpu.dimension_semantics<arbitrary>], iteration_bounds = array<i64: 1, 1>, scalar_prefetch = 0 : i64, scratch_operands = 0 : i64, tpu.core_type = #tpu.core_type<tc>, window_params = [{transform_indices = @transform_0, window_bounds = array<i64: 8, 32>}, {transform_indices = @transform_1, window_bounds = array<i64: 8, 32>}, {transform_indices = @transform_2, window_bounds = array<i64: 8, 1>}, {transform_indices = @transform_3, window_bounds = array<i64: 1, 8, 128>}, {transform_indices = @transform_4, window_bounds = array<i64: 1, 8, 128>}]} {
    %c0_i32 = arith.constant 0 : i32
    %0 = arith.cmpi eq, %arg1, %c0_i32 : i32
    %1 = arith.extui %0 : i1 to i32
    %c0_i32_0 = arith.constant 0 : i32
    %2 = arith.cmpi ne, %1, %c0_i32_0 : i32
    scf.if %2 {
      %cst_21 = arith.constant 0.000000e+00 : f32
      %30 = vector.broadcast %cst_21 : f32 to vector<1x8x128xf32>
      %c0_22 = arith.constant 0 : index
      %c0_23 = arith.constant 0 : index
      %c0_24 = arith.constant 0 : index
      %31 = vector.load %arg5[%c0_22, %c0_23, %c0_24] : memref<1x8x128xf32, #tpu.memory_space<vmem>>, vector<1x8x128xf32>
      tpu.vector_store %arg5[%c0_22, %c0_23, %c0_24], %30 {strides = array<i32>} : memref<1x8x128xf32, #tpu.memory_space<vmem>>, vector<1x8x128xf32>,
      %cst_25 = arith.constant 0.000000e+00 : f32
      %32 = vector.broadcast %cst_25 : f32 to vector<1x8x128xf32>
      %c0_26 = arith.constant 0 : index
      %c0_27 = arith.constant 0 : index
      %c0_28 = arith.constant 0 : index
      %33 = vector.load %arg6[%c0_26, %c0_27, %c0_28] : memref<1x8x128xf32, #tpu.memory_space<vmem>>, vector<1x8x128xf32>
      tpu.vector_store %arg6[%c0_26, %c0_27, %c0_28], %32 {strides = array<i32>} : memref<1x8x128xf32, #tpu.memory_space<vmem>>, vector<1x8x128xf32>,
    } else {
    }
    %c0 = arith.constant 0 : index
    %c0_1 = arith.constant 0 : index
    %3 = vector.load %arg2[%c0, %c0_1] : memref<8x32xf32, #tpu.memory_space<vmem>>, vector<8x32xf32>
    %c0_2 = arith.constant 0 : index
    %c0_3 = arith.constant 0 : index
    %4 = vector.load %arg3[%c0_2, %c0_3] : memref<8x32xf32, #tpu.memory_space<vmem>>, vector<8x32xf32>
    %5 = arith.subf %3, %4 : vector<8x32xf32>
    %6 = arith.mulf %5, %5 : vector<8x32xf32>
    %c0_4 = arith.constant 0 : index
    %c0_5 = arith.constant 0 : index
    %7 = vector.load %arg4[%c0_4, %c0_5] : memref<8x1xf32, #tpu.memory_space<vmem>>, vector<8x1xf32>
    %cst = arith.constant 5.000000e-01 : f32
    %8 = vector.broadcast %cst : f32 to vector<8x1xf32>
    %9 = arith.cmpf ogt, %7, %8 : vector<8x1xf32>
    %cst_6 = arith.constant 0.000000e+00 : f32
    %10 = vector.shape_cast %9 : vector<8x1xi1> to vector<8x1xi1>
    %11 = vector.broadcast %10 : vector<8x1xi1> to vector<8x32xi1>
    %12 = vector.broadcast %cst_6 : f32 to vector<8x32xf32>
    %13 = arith.select %11, %6, %12 : vector<8x32xi1>, vector<8x32xf32>
    %c0_7 = arith.constant 0 : index
    %c0_8 = arith.constant 0 : index
    %c0_9 = arith.constant 0 : index
    %14 = vector.load %arg5[%c0_7, %c0_8, %c0_9] : memref<1x8x128xf32, #tpu.memory_space<vmem>>, vector<1x8x128xf32>
    %15 = vector.shape_cast %6 : vector<8x32xf32> to vector<1x8x32xf32>
    %cst_10 = arith.constant dense<0.000000e+00> : vector<1xf32>
    %16 = vector.multi_reduction <add>, %15, %cst_10 [1, 2] : vector<1x8x32xf32> to vector<1xf32>
    %17 = vector.shape_cast %16 : vector<1xf32> to vector<1x1x1xf32>
    %18 = vector.extract %17[0, 0, 0] : f32 from vector<1x1x1xf32>
    %19 = vector.broadcast %18 : f32 to vector<1x8x128xf32>
    %20 = arith.addf %14, %19 : vector<1x8x128xf32>
    %c0_11 = arith.constant 0 : index
    %c0_12 = arith.constant 0 : index
    %c0_13 = arith.constant 0 : index
    %21 = vector.load %arg5[%c0_11, %c0_12, %c0_13] : memref<1x8x128xf32, #tpu.memory_space<vmem>>, vector<1x8x128xf32>
    tpu.vector_store %arg5[%c0_11, %c0_12, %c0_13], %20 {strides = array<i32>} : memref<1x8x128xf32, #tpu.memory_space<vmem>>, vector<1x8x128xf32>,
    %c0_14 = arith.constant 0 : index
    %c0_15 = arith.constant 0 : index
    %c0_16 = arith.constant 0 : index
    %22 = vector.load %arg6[%c0_14, %c0_15, %c0_16] : memref<1x8x128xf32, #tpu.memory_space<vmem>>, vector<1x8x128xf32>
    %23 = vector.shape_cast %13 : vector<8x32xf32> to vector<1x8x32xf32>
    %cst_17 = arith.constant dense<0.000000e+00> : vector<1xf32>
    %24 = vector.multi_reduction <add>, %23, %cst_17 [1, 2] : vector<1x8x32xf32> to vector<1xf32>
    %25 = vector.shape_cast %24 : vector<1xf32> to vector<1x1x1xf32>
    %26 = vector.extract %25[0, 0, 0] : f32 from vector<1x1x1xf32>
    %27 = vector.broadcast %26 : f32 to vector<1x8x128xf32>
    %28 = arith.addf %22, %27 : vector<1x8x128xf32>
    %c0_18 = arith.constant 0 : index
    %c0_19 = arith.constant 0 : index
    %c0_20 = arith.constant 0 : index
    %29 = vector.load %arg6[%c0_18, %c0_19, %c0_20] : memref<1x8x128xf32, #tpu.memory_space<vmem>>, vector<1x8x128xf32>
    tpu.vector_store %arg6[%c0_18, %c0_19, %c0_20], %28 {strides = array<i32>} : memref<1x8x128xf32, #tpu.memory_space<vmem>>, vector<1x8x128xf32>,
    return
  }
  func.func @transform_0(%arg0: i32, %arg1: i32) -> (i32, i32) {
    %c1_i32 = arith.constant 1 : i32
    %0 = arith.muli %arg0, %c1_i32 : i32
    %1 = arith.addi %0, %arg1 : i32
    %c0_i32 = arith.constant 0 : i32
    %c0_i32_0 = arith.constant 0 : i32
    return %1, %c0_i32 : i32, i32
  }
  func.func @transform_1(%arg0: i32, %arg1: i32) -> (i32, i32) {
    %c1_i32 = arith.constant 1 : i32
    %0 = arith.muli %arg0, %c1_i32 : i32
    %1 = arith.addi %0, %arg1 : i32
    %c0_i32 = arith.constant 0 : i32
    %c0_i32_0 = arith.constant 0 : i32
    return %1, %c0_i32 : i32, i32
  }
  func.func @transform_2(%arg0: i32, %arg1: i32) -> (i32, i32) {
    %c1_i32 = arith.constant 1 : i32
    %0 = arith.muli %arg0, %c1_i32 : i32
    %1 = arith.addi %0, %arg1 : i32
    %c0_i32 = arith.constant 0 : i32
    %c0_i32_0 = arith.constant 0 : i32
    return %1, %c0_i32 : i32, i32
  }
  func.func @transform_3(%arg0: i32, %arg1: i32) -> (i32, i32, i32) {
    %c0_i32 = arith.constant 0 : i32
    %c0_i32_0 = arith.constant 0 : i32
    %c0_i32_1 = arith.constant 0 : i32
    return %arg0, %c0_i32, %c0_i32_0 : i32, i32, i32
  }
  func.func @transform_4(%arg0: i32, %arg1: i32) -> (i32, i32, i32) {
    %c0_i32 = arith.constant 0 : i32
    %c0_i32_0 = arith.constant 0 : i32
    %c0_i32_1 = arith.constant 0 : i32
    return %arg0, %c0_i32, %c0_i32_0 : i32, i32, i32
  }
}

</mosaic_0001>

<bundles_post_ra>
// kernel: fair_mse_forward.1
= control target key start
LH: loop header
LB: loop body
LE: loop exit
PB: predicated region body
PF: predicated region fallthrough
CT: control target
= control target key end

     0   :  { %v147_v0 = vmov 0   ;;  %vm86_vm1 = vcmask 261120   ;;  %s188_s2 = inlined_call_operand.vmem [shape: f32[8,1], index: 2, kind: input, shape index: {}]   ;;  %s189_s0 = inlined_call_operand.vmem [shape: f32[8,32], index: 0, kind: input, shape index: {}]   ;;  %s190_s1 = inlined_call_operand.vmem [shape: f32[8,32], index: 1, kind: input, shape index: {}]   ;;  %s191_s3 = inlined_call_operand.vmem [shape: f32[1,8,128], index: 3, kind: output, shape index: {0}]   ;;  %s192_s4 = inlined_call_operand.vmem [shape: f32[1,8,128], index: 4, kind: output, shape index: {1}]  }
   0x1   :  { %146 = vset.pattern.permute.xlu0 %v147_v0  ;;  %v77_v1 = vld [vmem:[%s188_s2] sm:$0xff] }
   0x2   :  { %vm78_vm0 = vcmp.gt.f32.partialorder %v77_v1, 0.5  ;;  %v73_v3 = vld [vmem:[%s189_s0] sm:$0xff] }
   0x3   :  { %v79_v2 = vsel %vm78_vm0, 1, %v147_v0  ;;  %v74_v4 = vld [vmem:[%s190_s1] sm:$0xff] }
   0x4   :  { %81 = vperm.xlu0 %146, %v79_v2   ;;  %v75_v5 = vsub.f32 %v73_v3, %v74_v4 }
   0x6   :  { %v76_v6 = vmul.f32 %v75_v5, %v75_v5 }
   0x8   :  { %v87_v7 = vsel %vm86_vm1, %v76_v6, 0.0 }
  0x23   :  { %88 = vadd.xlane.f32.xlu0 %v87_v7 }
  0x83   :  { %v82_v8 = vpop.permute.xlu0 %81 }
  0x84   :  { %vm83_vm2 = vcmp.eq.s32.totalorder %v82_v8, 1 }
  0x85   :  { %v84_v9 = vsel %vm83_vm2, %v76_v6, 0.0 }
  0x86   :  { %v101_v10 = vsel %vm86_vm1, %v84_v9, 0.0 }
  0x87   :  { %102 = vadd.xlane.f32.xlu1 %v101_v10 }
  0xb0   :  { %v89_v11 = vpop.xlane.xlu0 %88 }
  0xb1   :  { %v90_v12 = vrot.slane %v89_v11, 4 }
  0xb3   :  { %v91_v13 = vadd.f32 %v90_v12, %v89_v11 }
  0xb5   :  { %v92_v14 = vrot.slane %v91_v13, 2 }
  0xb7   :  { %v93_v15 = vadd.f32 %v92_v14, %v91_v13 }
  0xb9   :  { %v94_v16 = vrot.slane %v93_v15, 1 }
  0xbb   :  { %v95_v17 = vadd.f32 %v94_v16, %v93_v15 }
  0xbd   :  { %140 = vpush %v95_v17 }
  0xee   :  { %s141_s0 = spop %140 }
  0xef   :  { %v97_v18 = vstv %s141_s0 }
  0xf0   :  { %99 = vst [vmem:[%s191_s3] sm:$0xff] %v97_v18 }
 0x114   :  { %v103_v19 = vpop.xlane.xlu1 %102 }
 0x115   :  { %v104_v20 = vrot.slane %v103_v19, 4 }
 0x117   :  { %v105_v21 = vadd.f32 %v104_v20, %v103_v19 }
 0x119   :  { %v106_v22 = vrot.slane %v105_v21, 2 }
 0x11b   :  { %v107_v23 = vadd.f32 %v106_v22, %v105_v21 }
 0x11d   :  { %v108_v24 = vrot.slane %v107_v23, 1 }
 0x11f   :  { %v109_v25 = vadd.f32 %v108_v24, %v107_v23 }
 0x121   :  { %142 = vpush %v109_v25 }
 0x152   :  { %s143_s21 = spop %142 }
 0x153   :  { %v111_v26 = vstv %s143_s21 }
 0x154   :  { %113 = vst [vmem:[%s192_s4] sm:$0xff] %v111_v26 }

</bundles_post_ra>
